<compile_context>
chip_gen: v7x
topology: tpu7x:2x2x1
jax: 0.10.0
libtpu: 0.0.40
codegen_flags: <defaults>
</compile_context>

<pallas_src>
import jax
import jax.numpy as jnp
from jax.experimental import pallas as pl
from jax.experimental.pallas import tpu as pltpu


def _round_up(x: int, m: int) -> int:
    return (x + m - 1) // m * m


def _vmem_capacity_bytes() -> int:
    """Per-core VMEM capacity; falls back to the smallest current part (v7x)."""
    try:
        cap = getattr(pltpu.get_tpu_info(), "vmem_capacity_bytes", None)
        if cap:
            return int(cap)
    except Exception:
        pass
    return 64 << 20


def _linear_packed_kernel(x_ref, w_ref, b_ref, o_ref):
    """One batch tile of y = x @ w.T + b for out_features == 1.

    x_ref: (TR, F*128)  VMEM - 128 batch rows per packed row (lane-dense DMA)
    w_ref: (F*128, 128) VMEM - selection weights, w_sel[F*c + f, c] = w[f]
    b_ref: (1,)         SMEM - scalar bias
    o_ref: (TR, 128)    VMEM - y for batch rows 128*q .. 128*q+127 in row q

    One MXU dot fuses the weight multiply, the reduction over the F features
    of each batch row, and the lane compaction, so no in-kernel relayout is
    needed and no large elementwise expression is materialized in vregs.
    """
    y = jnp.dot(x_ref[...], w_ref[...], preferred_element_type=jnp.float32)
    o_ref[...] = (y + b_ref[0]).astype(o_ref.dtype)


def linear_forward(x, weight, bias, *, block_rows=None):
    """Pallas equivalent of nn.Linear(n_feature, 1): y = x @ weight.T + bias."""
    B, F = x.shape
    assert weight.shape == (1, F), weight.shape
    assert bias.shape == (1,), bias.shape
    itemsize = jnp.dtype(x.dtype).itemsize

    # --- lane packing: (B, F) -> (B/128, F*128), a pure contiguous reshape ---
    Bp = _round_up(B, 128)
    if Bp != B:
        # TODO(synk): unaligned batches pay one extra pass over x (jnp.pad is a
        # full HBM copy); batches that are a multiple of 128 rows pay nothing.
        x = jnp.pad(x, ((0, Bp - B), (0, 0)))
    R = Bp // 128                       # packed rows (128 batch rows each)
    lanes = F * 128                     # lane width of one packed row
    x_packed = x.reshape(R, lanes)      # same contiguous buffer, no copy

    # Selection weights: w_sel[F*c + f, c] = w[f]; everything else zero.
    # TODO(synk): very large n_feature (>~256) needs a feature-tiled
    # accumulator path instead of this small resident (F*128, 128) matrix.
    w_row = weight.reshape(-1).astype(x.dtype)                        # (F,)
    w_sel = (jnp.repeat(jnp.eye(128, dtype=x.dtype), F, axis=0)
             * jnp.tile(w_row, 128)[:, None])                         # (F*128, 128)

    # --- generation-aware tile sizing (bytes, not rows) ---
    vmem_cap = _vmem_capacity_bytes()                 # 64 MiB v7x, 128 MiB v5e/v6e
    vmem_limit = min((3 * vmem_cap) // 4, 96 << 20)   # <=48 MiB v7x, up to 96 MiB
    if block_rows is None:
        tile_budget = min(vmem_cap // 4, 32 << 20)    # in+out payload per grid step
        block_rows = tile_budget // ((lanes + 128) * itemsize)
    tr = max(8, (block_rows // 8) * 8)
    if tr >= R:
        tr = R                                        # single full-extent block

    # Grid over cdiv(R, tr): no padding to the tile size — the last (partial)
    # block reads past R (rows are independent) and its out-of-bounds output
    # rows are masked on write by Pallas.
    out = pl.pallas_call(
        _linear_packed_kernel,
        out_shape=jax.ShapeDtypeStruct((R, 128), x.dtype),
        grid=(pl.cdiv(R, tr),),
        in_specs=[
            # Streamed, double-buffered packed batch tile (MiB-scale payload).
            pl.BlockSpec((tr, lanes), lambda i: (i, 0)),
            # Selection weights: constant index_map -> loaded once, resident.
            pl.BlockSpec((lanes, 128), lambda i: (0, 0)),
            # Scalar bias in SMEM.
            pl.BlockSpec(memory_space=pltpu.MemorySpace.SMEM),
        ],
        out_specs=pl.BlockSpec((tr, 128), lambda i: (i, 0)),
        compiler_params=pltpu.CompilerParams(
            # Batch tiles are independent -> shards across both TCs on v7x.
            dimension_semantics=("parallel",),
            vmem_limit_bytes=vmem_limit,
        ),
    )(x_packed, w_sel, bias)

    # (R, 128) row-major is exactly batch order; back to (B, 1).  Under jit
    # this reshape (and the slice on the padded path) fuses into the consumer.
    y = out.reshape(Bp, 1)
    return y if Bp == B else y[:B]


def _linear_ref(x, weight, bias):
    # Exact f32 reference (pure elementwise ops, no MXU precision ambiguity).
    return (x * weight).sum(axis=-1, keepdims=True) + bias


if __name__ == "__main__":
    key = jax.random.PRNGKey(0)
    kx, kw, kb = jax.random.split(key, 3)

    # Tolerance leaves headroom for per-generation MXU f32 pass behavior.
    tol = dict(atol=1e-3, rtol=1e-3)

    # 1) Primary check: D2L-style shapes, 128-aligned batch (no pad, 1 tile).
    batch, n_feature = 1024, 4
    x = jax.random.normal(kx, (batch, n_feature), dtype=jnp.float32)
    weight = jax.random.normal(kw, (1, n_feature), dtype=jnp.float32) * 0.01
    bias = jax.random.normal(kb, (1,), dtype=jnp.float32) * 0.01
    y = jax.block_until_ready(linear_forward(x, weight, bias))
    assert y.shape == (batch, 1)
    assert jnp.allclose(y, _linear_ref(x, weight, bias), **tol), float(
        jnp.max(jnp.abs(y - _linear_ref(x, weight, bias))))

    # 2) Multi-tile grid with a ragged last block (3200/128 = 25 packed rows,
    #    block_rows=8 -> 4 grid steps; the last one reads past the end).
    x2 = jax.random.normal(kx, (3200, 2), dtype=jnp.float32)
    w2 = jax.random.normal(kw, (1, 2), dtype=jnp.float32) * 0.01
    b2 = jax.random.normal(kb, (1,), dtype=jnp.float32) * 0.01
    y2 = jax.block_until_ready(linear_forward(x2, w2, b2, block_rows=8))
    assert y2.shape == (3200, 1)
    assert jnp.allclose(y2, _linear_ref(x2, w2, b2), **tol)

    # 3) Unaligned batch (1000 % 128 != 0) exercises the pad fallback.
    x3 = jax.random.normal(kb, (1000, n_feature), dtype=jnp.float32)
    y3 = jax.block_until_ready(linear_forward(x3, weight, bias))
    assert y3.shape == (1000, 1)
    assert jnp.allclose(y3, _linear_ref(x3, weight, bias), **tol)

    print("KERNEL_OK")
</pallas_src>

<mosaic_0001>
module attributes {stable_mosaic.version = 11 : i64} {
  func.func @_linear_packed_kernel(%arg0: i32, %arg1: memref<8x512xf32, #tpu.memory_space<vmem>>, %arg2: memref<512x128xf32, #tpu.memory_space<vmem>>, %arg3: memref<1xf32, #tpu.memory_space<smem>>, %arg4: memref<8x128xf32, #tpu.memory_space<vmem>>) attributes {dimension_semantics = [#tpu.dimension_semantics<parallel>], iteration_bounds = array<i64: 1>, scalar_prefetch = 0 : i64, scratch_operands = 0 : i64, tpu.core_type = #tpu.core_type<tc>, window_params = [{transform_indices = @transform_0, window_bounds = array<i64: 8, 512>}, {pipeline_mode = #tpu.pipeline_mode<synchronous>, transform_indices = @transform_1, window_bounds = array<i64: 512, 128>}, {transform_indices = @transform_2, window_bounds = array<i64: 1>}, {transform_indices = @transform_3, window_bounds = array<i64: 8, 128>}]} {
    %c0 = arith.constant 0 : index
    %c0_0 = arith.constant 0 : index
    %0 = vector.load %arg1[%c0, %c0_0] : memref<8x512xf32, #tpu.memory_space<vmem>>, vector<8x512xf32>
    %c0_1 = arith.constant 0 : index
    %c0_2 = arith.constant 0 : index
    %1 = vector.load %arg2[%c0_1, %c0_2] : memref<512x128xf32, #tpu.memory_space<vmem>>, vector<512x128xf32>
    %cst = arith.constant dense<0.000000e+00> : vector<8x128xf32>
    %2 = tpu.matmul %0, %1, %cst {dimension_numbers = #tpu.dot_dimension_numbers<[1], [0], [0], [1], [0, 0, 1, 1], [], []>} : vector<8x512xf32>, vector<512x128xf32>, vector<8x128xf32> -> vector<8x128xf32>
    %c0_3 = arith.constant 0 : index
    %3 = memref.load %arg3[%c0_3] : memref<1xf32, #tpu.memory_space<smem>>
    %4 = vector.broadcast %3 : f32 to vector<8x128xf32>
    %5 = arith.addf %2, %4 : vector<8x128xf32>
    %c0_4 = arith.constant 0 : index
    %c0_5 = arith.constant 0 : index
    %6 = vector.load %arg4[%c0_4, %c0_5] : memref<8x128xf32, #tpu.memory_space<vmem>>, vector<8x128xf32>
    tpu.vector_store %arg4[%c0_4, %c0_5], %5 {strides = array<i32>} : memref<8x128xf32, #tpu.memory_space<vmem>>, vector<8x128xf32>,
    return
  }
  func.func @transform_0(%arg0: i32) -> (i32, i32) {
    %c0_i32 = arith.constant 0 : i32
    %c0_i32_0 = arith.constant 0 : i32
    return %arg0, %c0_i32 : i32, i32
  }
  func.func @transform_1(%arg0: i32) -> (i32, i32) {
    %c0_i32 = arith.constant 0 : i32
    %c0_i32_0 = arith.constant 0 : i32
    %c0_i32_1 = arith.constant 0 : i32
    return %c0_i32, %c0_i32_0 : i32, i32
  }
  func.func @transform_2(%arg0: i32) -> i32 {
    %c0_i32 = arith.constant 0 : i32
    %c0_i32_0 = arith.constant 0 : i32
    return %c0_i32 : i32
  }
  func.func @transform_3(%arg0: i32) -> (i32, i32) {
    %c0_i32 = arith.constant 0 : i32
    %c0_i32_0 = arith.constant 0 : i32
    return %arg0, %c0_i32 : i32, i32
  }
}

</mosaic_0001>

<bundles_post_ra>
// kernel: tpu_custom_call.1
= control target key start
LH: loop header
LB: loop body
LE: loop exit
PB: predicated region body
PF: predicated region fallthrough
CT: control target
= control target key end

     0   :  { %9 = vsyncpa [#allocation4], 0  ;;  %s551_s0 = inlined_call_operand.hbm [shape: f32[8,512], index: 0, kind: input, shape index: {}]   ;;  %s552_s1 = inlined_call_operand.hbm [shape: f32[512,128], index: 1, kind: input, shape index: {}]   ;;  %s553_s2 = inlined_call_operand.<no memory space> [shape: f32[1], index: 2, kind: input, shape index: {}]   ;;  %s554_s3 = inlined_call_operand.hbm [shape: f32[8,128], index: 3, kind: output, shape index: {}]  }
   0x1   :  { %10 = vsyncpa [#allocation7], 0 }
   0x2   :  { %11 = vsyncpa [#allocation5], 0  ;;  %s480_s12 = smov [#allocation3]   ;;  %s481_s14 = smov [#allocation6]  }
   0x3   :  { %s18_s13 = sshll.u32 %s480_s12, 4  ;;  %s27_s15 = sshll.u32 %s481_s14, 4  ;;  %s19_s13 = int_to_ptr.vmem [resolvable:$true] %s18_s13  ;;  %s505_s15 = int_to_ptr.vmem [resolvable:$true] %s27_s15 }
   0x4   :  { %s408_s18 = scalar_lea.hbm %s551_s0, 512 }
   0x5   :  { %p409_p0 = scmp.ne.s32.totalorder %s551_s0, %s408_s18  ;;  %p412_p1 = scmp.lt.u32.totalorder %s408_s18, %s551_s0 }
   0x7   :  { %p414_p2 = pnand %p412_p1, %p409_p0 }
   0x9   :  { %417 = shalt.err (!%p414_p2)
}
   0xa   :  { %s418_s23 = scalar_lea.vmem %s19_s13, 512  ;;  %p423_p4 = scmp.lt.s32.totalorder %s19_s13, %s19_s13 }
   0xb   :  { %p419_p3 = scmp.ne.s32.totalorder %s19_s13, %s418_s23  ;;  %p424_p5 = scmp.lt.s32.totalorder %s418_s23, %s418_s23 }
   0xd   :  { %p425_p6 = por %p424_p5, %p423_p4 }
   0xf   :  { %p426_p7 = pnand %p425_p6, %p419_p3 }
  0x11   :  { %429 = shalt.err (!%p426_p7)
}
  0x12   :  { %21 = dma.hbm_to_vmem [thread:$0]  %s551_s0, 512, %s19_s13, [#allocation4]  }
  0x13   :  { %s430_s28 = scalar_lea.hbm %s552_s1, 8192 }
  0x14   :  { %p431_p8 = scmp.ne.s32.totalorder %s552_s1, %s430_s28  ;;  %p434_p9 = scmp.lt.u32.totalorder %s430_s28, %s552_s1 }
  0x16   :  { %p436_p10 = pnand %p434_p9, %p431_p8 }
  0x18   :  { %439 = shalt.err (!%p436_p10)
}
  0x19   :  { %s440_s6 = scalar_lea.vmem %s505_s15, 8192  ;;  %p445_p12 = scmp.lt.s32.totalorder %s505_s15, %s505_s15 }
  0x1a   :  { %p441_p11 = scmp.ne.s32.totalorder %s505_s15, %s440_s6  ;;  %p446_p13 = scmp.lt.s32.totalorder %s440_s6, %s440_s6 }
  0x1c   :  { %p447_p0 = por %p446_p13, %p445_p12 }
  0x1e   :  { %p448_p1 = pnand %p447_p0, %p441_p11 }
  0x20   :  { %451 = shalt.err (!%p448_p1)
}
  0x21   :  { %s482_s0 = smov 128   ;;  %s483_s7 = smov 8  }
  0x22   :  { %33 = dma.hbm_to_vmem [thread:$0]  %s552_s1, 8192, %s505_s15, [#allocation7], %s482_s0, %s482_s0, %s483_s7  }
  0x23   :  { %474 = dma.done.wait [#allocation4], 512  }
  0x24   :  { %475 = vsyncadd [#allocation4], 4294966784 }
  0x25   :  { %476 = dma.done.wait [#allocation7], 8192  }
  0x26   :  { %477 = vsyncadd [#allocation7], 4294959104  ;;  %v62_v0 = vld [vmem:[#allocation6 + $0x80] sm:$0xff]  ;;  %v63_v1 = vld [vmem:[#allocation6 + $0x88] sm:$0xff]  ;;  %s484_s11 = smov [#allocation8]  }
  0x27   :  { %v46_v2 = vld [vmem:[#allocation6] sm:$0xff]  ;;  %v339_v3 = vpack.c.bf16 %v63_v1, %v62_v0  ;;  %v47_v4 = vld [vmem:[#allocation6 + $0x8] sm:$0xff]  ;;  %v64_v11 = vld [vmem:[#allocation6 + $0x90] sm:$0xff]  ;;  %s259_s12 = sshll.u32 %s484_s11, 4  ;;  %s260_s12 = int_to_ptr.vmem [resolvable:$true] %s259_s12 }
  0x28   :  { %v94_v5 = vld [vmem:[#allocation6 + $0x180] sm:$0xff]  ;;  %v95_v6 = vld [vmem:[#allocation6 + $0x188] sm:$0xff]  ;;  %v341_v7 = vpack.c.bf16 %v47_v4, %v46_v2  ;;  %v65_v13 = vld [vmem:[#allocation6 + $0x98] sm:$0xff]  ;;  %s452_s13 = scalar_lea.vmem %s260_s12, 128  ;;  %p457_p3 = scmp.lt.s32.totalorder %s260_s12, %s260_s12 }
  0x29   :  { %v371_v8 = vpack.c.bf16 %v95_v6, %v94_v5  ;;  %v78_v9 = vld [vmem:[#allocation6 + $0x100] sm:$0xff]  ;;  %v79_v10 = vld [vmem:[#allocation6 + $0x108] sm:$0xff]  ;;  %340 = vmatprep.subr.bf16.mxu0 %v339_v3  ;;  %v48_v14 = vld [vmem:[#allocation6 + $0x10] sm:$0xff]  ;;  %v343_v16 = vpack.c.bf16 %v65_v13, %v64_v11  ;;  %p453_p2 = scmp.ne.s32.totalorder %s260_s12, %s452_s13  ;;  %p458_p4 = scmp.lt.s32.totalorder %s452_s13, %s452_s13 }
  0x2a   :  { %v373_v12 = vpack.c.bf16 %v79_v10, %v78_v9  ;;  %v49_v15 = vld [vmem:[#allocation6 + $0x18] sm:$0xff]  ;;  %342 = vmatpush3.bf16.msra.mxu0 %v341_v7  ;;  %v96_v18 = vld [vmem:[#allocation6 + $0x190] sm:$0xff]  ;;  %v66_v23 = vld [vmem:[#allocation6 + $0xa0] sm:$0xff] }
  0x2b   :  { %372 = vmatprep.subr.bf16.mxu1 %v371_v8  ;;  %v345_v17 = vpack.c.bf16 %v49_v15, %v48_v14  ;;  %v97_v19 = vld [vmem:[#allocation6 + $0x198] sm:$0xff]  ;;  %v80_v20 = vld [vmem:[#allocation6 + $0x110] sm:$0xff]  ;;  %v67_v24 = vld [vmem:[#allocation6 + $0xa8] sm:$0xff]  ;;  %344 = vmatprep.subr.bf16.mxu0 %v343_v16  ;;  %p459_p5 = por %p458_p4, %p457_p3 }
  0x2c   :  { %374 = vmatpush3.bf16.msra.mxu1 %v373_v12  ;;  %v375_v21 = vpack.c.bf16 %v97_v19, %v96_v18  ;;  %v81_v22 = vld [vmem:[#allocation6 + $0x118] sm:$0xff]  ;;  %v347_v26 = vpack.c.bf16 %v67_v24, %v66_v23  ;;  %v50_v27 = vld [vmem:[#allocation6 + $0x20] sm:$0xff]  ;;  %v51_v28 = vld [vmem:[#allocation6 + $0x28] sm:$0xff] }
  0x2d   :  { %v377_v25 = vpack.c.bf16 %v81_v22, %v80_v20  ;;  %v98_v29 = vld [vmem:[#allocation6 + $0x1a0] sm:$0xff]  ;;  %v99_v30 = vld [vmem:[#allocation6 + $0x1a8] sm:$0xff]  ;;  %v349_v33 = vpack.c.bf16 %v51_v28, %v50_v27  ;;  %v68_v35 = vld [vmem:[#allocation6 + $0xb0] sm:$0xff]  ;;  %p460_p6 = pnand %p459_p5, %p453_p2 }
  0x2e   :  { %376 = vmatprep.subr.bf16.mxu1 %v375_v21  ;;  %v82_v31 = vld [vmem:[#allocation6 + $0x120] sm:$0xff]  ;;  %v83_v32 = vld [vmem:[#allocation6 + $0x128] sm:$0xff]  ;;  %346 = vmatpush3.bf16.msra.mxu0 %v345_v17  ;;  %v379_v34 = vpack.c.bf16 %v99_v30, %v98_v29  ;;  %v69_v36 = vld [vmem:[#allocation6 + $0xb8] sm:$0xff] }
  0x2f   :  { %v52_v37 = vld [vmem:[#allocation6 + $0x30] sm:$0xff]  ;;  %348 = vmatprep.subr.bf16.mxu0 %v347_v26  ;;  %v381_v38 = vpack.c.bf16 %v83_v32, %v82_v31  ;;  %v351_v39 = vpack.c.bf16 %v69_v36, %v68_v35  ;;  %v53_v40 = vld [vmem:[#allocation6 + $0x38] sm:$0xff]  ;;  %v70_v46 = vld [vmem:[#allocation6 + $0xc0] sm:$0xff] }
  0x30   :  { %378 = vmatpush3.bf16.msra.mxu1 %v377_v25  ;;  %v100_v41 = vld [vmem:[#allocation6 + $0x1b0] sm:$0xff]  ;;  %v101_v42 = vld [vmem:[#allocation6 + $0x1b8] sm:$0xff]  ;;  %v71_v47 = vld [vmem:[#allocation6 + $0xc8] sm:$0xff]  ;;  %v353_v48 = vpack.c.bf16 %v53_v40, %v52_v37  ;;  %v111_v37 = vstv %s553_s2 }
  0x31   :  { %380 = vmatprep.subr.bf16.mxu1 %v379_v34  ;;  %v383_v43 = vpack.c.bf16 %v101_v42, %v100_v41  ;;  %v84_v44 = vld [vmem:[#allocation6 + $0x130] sm:$0xff]  ;;  %v85_v45 = vld [vmem:[#allocation6 + $0x138] sm:$0xff]  ;;  %v102_v49 = vld [vmem:[#allocation6 + $0x1c0] sm:$0xff]  ;;  %v355_v52 = vpack.c.bf16 %v71_v47, %v70_v46 }
  0x32   :  { %350 = vmatpush3.bf16.msra.mxu0 %v349_v33  ;;  %v103_v50 = vld [vmem:[#allocation6 + $0x1c8] sm:$0xff]  ;;  %v385_v51 = vpack.c.bf16 %v85_v45, %v84_v44  ;;  %v54_v53 = vld [vmem:[#allocation6 + $0x40] sm:$0xff]  ;;  %v72_v58 = vld [vmem:[#allocation6 + $0xd0] sm:$0xff] }
  0x33   :  { %352 = vmatprep.subr.bf16.mxu0 %v351_v39  ;;  %v55_v54 = vld [vmem:[#allocation6 + $0x48] sm:$0xff]  ;;  %v86_v55 = vld [vmem:[#allocation6 + $0x140] sm:$0xff]  ;;  %v387_v56 = vpack.c.bf16 %v103_v50, %v102_v49  ;;  %v73_v59 = vld [vmem:[#allocation6 + $0xd8] sm:$0xff] }
  0x34   :  { %382 = vmatpush3.bf16.msra.mxu1 %v381_v38  ;;  %v87_v57 = vld [vmem:[#allocation6 + $0x148] sm:$0xff]  ;;  %v104_v60 = vld [vmem:[#allocation6 + $0x1d0] sm:$0xff]  ;;  %v105_v61 = vld [vmem:[#allocation6 + $0x1d8] sm:$0xff]  ;;  %v357_v62 = vpack.c.bf16 %v55_v54, %v54_v53  ;;  %v359_v0 = vpack.c.bf16 %v73_v59, %v72_v58 }
  0x35   :  { %384 = vmatprep.subr.bf16.mxu1 %v383_v43  ;;  %v389_v63 = vpack.c.bf16 %v87_v57, %v86_v55  ;;  %v56_v1 = vld [vmem:[#allocation6 + $0x50] sm:$0xff]  ;;  %v57_v2 = vld [vmem:[#allocation6 + $0x58] sm:$0xff]  ;;  %v391_v4 = vpack.c.bf16 %v105_v61, %v104_v60  ;;  %v74_v6 = vld [vmem:[#allocation6 + $0xe0] sm:$0xff] }
  0x36   :  { %354 = vmatpush3.bf16.msra.mxu0 %v353_v48  ;;  %v88_v3 = vld [vmem:[#allocation6 + $0x150] sm:$0xff]  ;;  %v89_v5 = vld [vmem:[#allocation6 + $0x158] sm:$0xff]  ;;  %v75_v7 = vld [vmem:[#allocation6 + $0xe8] sm:$0xff]  ;;  %v361_v10 = vpack.c.bf16 %v57_v2, %v56_v1 }
  0x37   :  { %356 = vmatprep.subr.bf16.mxu0 %v355_v52  ;;  %v106_v8 = vld [vmem:[#allocation6 + $0x1e0] sm:$0xff]  ;;  %v107_v9 = vld [vmem:[#allocation6 + $0x1e8] sm:$0xff]  ;;  %v393_v13 = vpack.c.bf16 %v89_v5, %v88_v3  ;;  %v363_v14 = vpack.c.bf16 %v75_v7, %v74_v6  ;;  %v76_v19 = vld [vmem:[#allocation6 + $0xf0] sm:$0xff] }
  0x38   :  { %386 = vmatpush3.bf16.msra.mxu1 %v385_v51  ;;  %v58_v11 = vld [vmem:[#allocation6 + $0x60] sm:$0xff]  ;;  %v59_v12 = vld [vmem:[#allocation6 + $0x68] sm:$0xff]  ;;  %v395_v18 = vpack.c.bf16 %v107_v9, %v106_v8  ;;  %v77_v20 = vld [vmem:[#allocation6 + $0xf8] sm:$0xff] }
  0x39   :  { %388 = vmatprep.subr.bf16.mxu1 %v387_v56  ;;  %v90_v15 = vld [vmem:[#allocation6 + $0x160] sm:$0xff]  ;;  %v91_v16 = vld [vmem:[#allocation6 + $0x168] sm:$0xff]  ;;  %v45_v21 = vld [vmem:[#allocation3 + $0x18] sm:$0xff]  ;;  %v365_v24 = vpack.c.bf16 %v59_v12, %v58_v11  ;;  %v367_v26 = vpack.c.bf16 %v77_v20, %v76_v19 }
  0x3a   :  { %358 = vmatpush3.bf16.msra.mxu0 %v357_v62  ;;  %v43_v17 = vld [vmem:[#allocation3 + $0x8] sm:$0xff]  ;;  %v108_v22 = vld [vmem:[#allocation6 + $0x1f0] sm:$0xff]  ;;  %v109_v23 = vld [vmem:[#allocation6 + $0x1f8] sm:$0xff]  ;;  %246 = vmatprep.mubr.f32.mxu1 %v45_v21  ;;  %v397_v25 = vpack.c.bf16 %v91_v16, %v90_v15 }
  0x3b   :  { %360 = vmatprep.subr.bf16.mxu0 %v359_v0  ;;  %176 = vmatprep.mubr.f32.mxu0 %v43_v17  ;;  %v60_v27 = vld [vmem:[#allocation6 + $0x70] sm:$0xff]  ;;  %v61_v28 = vld [vmem:[#allocation6 + $0x78] sm:$0xff]  ;;  %v399_v29 = vpack.c.bf16 %v109_v23, %v108_v22  ;;  %v42_v34 = vld [vmem:[#allocation3] sm:$0xff] }
  0x3c   :  { %390 = vmatpush3.bf16.msra.mxu1 %v389_v63  ;;  %v92_v30 = vld [vmem:[#allocation6 + $0x170] sm:$0xff]  ;;  %v93_v31 = vld [vmem:[#allocation6 + $0x178] sm:$0xff]  ;;  %v369_v32 = vpack.c.bf16 %v61_v28, %v60_v27 }
  0x3d   :  { %392 = vmatprep.subr.bf16.mxu1 %v391_v4  ;;  %v401_v33 = vpack.c.bf16 %v93_v31, %v92_v30  ;;  %v44_v35 = vld [vmem:[#allocation3 + $0x10] sm:$0xff] }
  0x3e   :  { %362 = vmatpush3.bf16.msra.mxu0 %v361_v10 }
  0x3f   :  { %364 = vmatprep.subr.bf16.mxu0 %v363_v14 }
  0x40   :  { %394 = vmatpush3.bf16.msra.mxu1 %v393_v13 }
  0x41   :  { %396 = vmatprep.subr.bf16.mxu1 %v395_v18 }
  0x42   :  { %366 = vmatpush3.bf16.msra.mxu0 %v365_v24 }
  0x43   :  { %368 = vmatprep.subr.bf16.mxu0 %v367_v26 }
  0x44   :  { %398 = vmatpush3.bf16.msra.mxu1 %v397_v25 }
  0x45   :  { %400 = vmatprep.subr.bf16.mxu1 %v399_v29 }
  0x46   :  { %370 = vmatpush3.bf16.msra.mxu0 %v369_v32 }
  0x48   :  { %402 = vmatpush3.bf16.msra.mxu1 %v401_v33 }
  0x49   :  { %177 = vmatmul.mubr.f32.vlgmr.msra.gmra.mrb[0].mxu0 %v42_v34 }
  0x4b   :  { %247 = vmatmul.mubr.f32.vlgmr.msra.gmra.mrb[0].mxu1 %v44_v35 }
 0x11c   :  { %v301_v36 = vpop.f32.mrb[0].mxu0 }
 0x11d   :  { %v302_v38 = vpop.f32.mrb[1].mxu0 }
 0x11e   :  { %v336_v39 = vpop.f32.mrb[0].mxu1  ;;  %v303_v40 = vadd.f32 %v302_v38, %v301_v36 }
 0x11f   :  { %v337_v41 = vpop.f32.mrb[1].mxu1 }
 0x120   :  { %v338_v42 = vadd.f32 %v337_v41, %v336_v39  ;;  %v179_v43 = vadd.f32 %v303_v40, %v111_v37 }
 0x122   :  { %v249_v44 = vadd.f32 %v338_v42, %v179_v43 }
 0x124   :  { %252 = vst [vmem:[#allocation8] sm:$0xff] %v249_v44 }
 0x125   :  { %463 = shalt.err (!%p460_p6)
}
 0x126   :  { %s464_s15 = scalar_lea.hbm %s554_s3, 128 }
 0x127   :  { %p465_p7 = scmp.ne.s32.totalorder %s554_s3, %s464_s15  ;;  %p468_p8 = scmp.lt.u32.totalorder %s464_s15, %s554_s3 }
 0x129   :  { %p470_p9 = pnand %p468_p8, %p465_p7 }
 0x12b   :  { %473 = shalt.err (!%p470_p9)
}
 0x12c   :  { %262 = dma.vmem_to_hbm [thread:$0]  %s260_s12, 128, %s554_s3, [#allocation5]  }
 0x12d   :  { %478 = dma.done.wait [#allocation5], 128  }
 0x12e   :  { %479 = vsyncadd [#allocation5], 4294967168 }
 0x12f   :  { %266 = vsyncpa [#allocation4], 1 }
 0x130   :  { %267 = vsyncpa [#allocation7], 1 }
 0x131   :  { %268 = vsyncpa [#allocation5], 1 }

</bundles_post_ra>
